<compile_context>
chip_gen: v6e
topology: v6e:2x2x1
jax: 0.10.0
libtpu: 0.0.40
codegen_flags: <defaults>
</compile_context>

<pallas_src>
import jax
import jax.numpy as jnp
from jax.experimental import pallas as pl
from jax.experimental.pallas import tpu as pltpu

COLS = 1024        # slab width: 8 * 128 lanes -> lane-dense, unmasked stores
TILE_ROWS = 512    # 512 x 1024 f32 = 2 MiB per buffer per grid step


def _logsigmoid_kernel(x_ref, o_ref):
    # DMA happens in the native dtype; do the math in f32 (casts ride the VPU,
    # which has huge slack in this HBM-bound kernel; keeps v5e's f32-only
    # EUP/VPU path happy too).
    x = x_ref[...].astype(jnp.float32)
    # Stable logsigmoid:  -log(1 + exp(-x)) == min(x, 0) - log1p(exp(-|x|)).
    # Same EUP cost (one exp + one log); abs/min/add are free VPU filler.
    y = jnp.minimum(x, 0.0) - jnp.log1p(jnp.exp(-jnp.abs(x)))
    o_ref[...] = y.astype(o_ref.dtype)


def custom_logsigmoid(x):
    orig_shape = x.shape
    dtype = x.dtype

    flat = x.reshape(-1)           # metadata-only for contiguous inputs
    n = flat.shape[0]

    # Fast path: skip the pad copy when the flat size already fits the slab.
    rem = n % COLS
    if rem != 0:
        flat = jnp.pad(flat, (0, COLS - rem))
    rows = flat.shape[0] // COLS
    slab = flat.reshape(rows, COLS)

    if rows <= TILE_ROWS:
        # Full-array block (allowed regardless of 8-row alignment).
        block_rows = rows
        grid = (1,)
    else:
        block_rows = TILE_ROWS
        # Ragged last block is masked by Pallas; garbage in the OOB input
        # region only feeds discarded outputs (pure elementwise op).
        grid = (pl.cdiv(rows, TILE_ROWS),)

    out = pl.pallas_call(
        _logsigmoid_kernel,
        out_shape=jax.ShapeDtypeStruct((rows, COLS), dtype),
        grid_spec=pltpu.PrefetchScalarGridSpec(
            num_scalar_prefetch=0,
            grid=grid,
            in_specs=[pl.BlockSpec((block_rows, COLS), lambda i: (i, 0))],
            out_specs=pl.BlockSpec((block_rows, COLS), lambda i: (i, 0)),
        ),
        compiler_params=pltpu.CompilerParams(
            dimension_semantics=("parallel",),
        ),
    )(slab)

    return out.reshape(-1)[:n].reshape(orig_shape)


if __name__ == "__main__":
    key = jax.random.PRNGKey(0)
    # Small NCHW-like input consistent with an elementwise activation module.
    x = jax.random.normal(key, (2, 4, 16, 16), dtype=jnp.float32) * 3.0

    y = custom_logsigmoid(x)
    jax.block_until_ready(y)

    # Sanity check against the exact PyTorch formula (inputs are bounded, so
    # the stable form matches the naive form to f32 precision).
    y_ref = -jnp.log(1.0 + jnp.exp(-x))
    assert y.shape == x.shape and y.dtype == x.dtype
    assert jnp.max(jnp.abs(y - y_ref)) < 1e-5

    print("KERNEL_OK")
</pallas_src>

<mosaic_0001>
module attributes {stable_mosaic.version = 11 : i64} {
  func.func @_logsigmoid_kernel(%arg0: i32, %arg1: memref<2x1024xf32, #tpu.memory_space<vmem>>, %arg2: memref<2x1024xf32, #tpu.memory_space<vmem>>) attributes {dimension_semantics = [#tpu.dimension_semantics<parallel>], iteration_bounds = array<i64: 1>, scalar_prefetch = 0 : i64, scratch_operands = 0 : i64, tpu.core_type = #tpu.core_type<tc>, window_params = [{transform_indices = @transform_0, window_bounds = array<i64: 2, 1024>}, {transform_indices = @transform_1, window_bounds = array<i64: 2, 1024>}]} {
    %c0 = arith.constant 0 : index
    %c0_0 = arith.constant 0 : index
    %0 = vector.load %arg1[%c0, %c0_0] : memref<2x1024xf32, #tpu.memory_space<vmem>>, vector<2x1024xf32>
    %cst = arith.constant 0.000000e+00 : f32
    %1 = vector.broadcast %cst : f32 to vector<2x1024xf32>
    %2 = arith.minimumf %0, %1 : vector<2x1024xf32>
    %3 = math.absf %0 : vector<2x1024xf32>
    %cst_1 = arith.constant 0.000000e+00 : f32
    %4 = vector.broadcast %cst_1 : f32 to vector<2x1024xf32>
    %5 = arith.subf %4, %3 : vector<2x1024xf32>
    %6 = math.exp %5 : vector<2x1024xf32>
    %7 = math.log1p %6 : vector<2x1024xf32>
    %8 = arith.subf %2, %7 : vector<2x1024xf32>
    %c0_2 = arith.constant 0 : index
    %c0_3 = arith.constant 0 : index
    %9 = vector.load %arg2[%c0_2, %c0_3] : memref<2x1024xf32, #tpu.memory_space<vmem>>, vector<2x1024xf32>
    tpu.vector_store %arg2[%c0_2, %c0_3], %8 {strides = array<i32>} : memref<2x1024xf32, #tpu.memory_space<vmem>>, vector<2x1024xf32>,
    return
  }
  func.func @transform_0(%arg0: i32) -> (i32, i32) {
    %c0_i32 = arith.constant 0 : i32
    %c0_i32_0 = arith.constant 0 : i32
    return %arg0, %c0_i32 : i32, i32
  }
  func.func @transform_1(%arg0: i32) -> (i32, i32) {
    %c0_i32 = arith.constant 0 : i32
    %c0_i32_0 = arith.constant 0 : i32
    return %arg0, %c0_i32 : i32, i32
  }
}

</mosaic_0001>

<bundles_post_ra>
// kernel: tpu_custom_call.1
= control target key start
LH: loop header
LB: loop body
LE: loop exit
PB: predicated region body
PF: predicated region fallthrough
CT: control target
= control target key end

     0   :  { %6 = vsyncpa [#allocation3], 0  ;;  %s142_s0 = inlined_call_operand.hbm [shape: f32[2,1024], index: 0, kind: input, shape index: {}]   ;;  %s143_s1 = inlined_call_operand.hbm [shape: f32[2,1024], index: 1, kind: output, shape index: {}]  }
   0x1   :  { %7 = vsyncpa [#allocation4], 0  ;;  %s124_s6 = smov [#allocation2]  }
   0x2   :  { %s14_s7 = sshll.u32 %s124_s6, 4  ;;  %s15_s7 = int_to_ptr.vmem [resolvable:$true] %s14_s7 }
   0x3   :  { %s88_s8 = scalar_lea.vmem %s15_s7, 256  ;;  %p93_p1 = scmp.lt.s32.totalorder %s15_s7, %s15_s7 }
   0x4   :  { %p89_p0 = scmp.ne.s32.totalorder %s15_s7, %s88_s8  ;;  %p94_p2 = scmp.lt.s32.totalorder %s88_s8, %s88_s8 }
   0x6   :  { %p95_p3 = por %p94_p2, %p93_p1 }
   0x8   :  { %p96_p4 = pnand %p95_p3, %p89_p0 }
   0xa   :  { %99 = shalt.err (!%p96_p4)
}
   0xb   :  { %17 = dma.hbm_to_vmem [thread:$0]  %s142_s0, 256, %s15_s7, [#allocation3]  }
   0xc   :  { %120 = dma.done.wait [#allocation3], 256  }
   0xd   :  { %121 = vsyncadd [#allocation3], 4294967040  ;;  %v21_v0 = vld [vmem:[#allocation2] sm:$0xff]  ;;  %v22_v1 = vld [vmem:[#allocation2 + $0x8] sm:$0xff]  ;;  %s125_s0 = smov [#allocation5]  }
   0xe   :  { %v25_v2 = vand.u32 2147483647, %v21_v0  ;;  %v26_v3 = vand.u32 2147483647, %v22_v1  ;;  %v23_v20 = vmin.f32 %v21_v0, 0.0  ;;  %v24_v24 = vmin.f32 %v22_v1, 0.0 }
   0xf   :  { %s61_s11 = sshll.u32 %s125_s0, 4  ;;  %s62_s11 = int_to_ptr.vmem [resolvable:$true] %s61_s11 }
  0x10   :  { %v27_v4 = vsub.f32 0.0, %v25_v2  ;;  %v28_v5 = vsub.f32 0.0, %v26_v3  ;;  %s100_s12 = scalar_lea.vmem %s62_s11, 256  ;;  %p105_p6 = scmp.lt.s32.totalorder %s62_s11, %s62_s11 }
  0x11   :  { %p101_p5 = scmp.ne.s32.totalorder %s62_s11, %s100_s12  ;;  %p106_p7 = scmp.lt.s32.totalorder %s100_s12, %s100_s12 }
  0x12   :  { %v29_v6 = vmul.f32 1.442695, %v27_v4  ;;  %v31_v7 = vmul.f32 1.442695, %v28_v5 }
  0x13   :  { %p107_p8 = por %p106_p7, %p105_p6 }
  0x14   :  { %72 = vpow2.f32 %v29_v6 }
  0x15   :  { %74 = vpow2.f32 %v31_v7  ;;  %p108_p9 = pnand %p107_p8, %p101_p5 }
  0x21   :  { %v73_v8 = vpop.eup %72 }
  0x22   :  { %v75_v9 = vpop.eup %74  ;;  %v33_v10 = vadd.f32 1.0, %v73_v8  ;;  %v36_v12 = vmul.f32 -0.5, %v73_v8  ;;  %v39_v15 = vand.u32 2147483647, %v73_v8 }
  0x23   :  { %v42_v11 = vadd.f32 1.0, %v75_v9  ;;  %v45_v13 = vmul.f32 -0.5, %v75_v9  ;;  %v48_v17 = vand.u32 2147483647, %v75_v9 }
  0x24   :  { %76 = vlog2.f32 %v33_v10  ;;  %v37_v14 = vadd.f32 1.0, %v36_v12  ;;  %vm40_vm0 = vcmp.lt.f32.partialorder %v39_v15, 0.0004427343 }
  0x25   :  { %78 = vlog2.f32 %v42_v11  ;;  %v46_v16 = vadd.f32 1.0, %v45_v13  ;;  %vm49_vm1 = vcmp.lt.f32.partialorder %v48_v17, 0.0004427343 }
  0x26   :  { %v38_v18 = vmul.f32 %v73_v8, %v37_v14 }
  0x27   :  { %v47_v21 = vmul.f32 %v75_v9, %v46_v16 }
  0x31   :  { %v77_v19 = vpop.eup %76 }
  0x32   :  { %v79_v22 = vpop.eup %78  ;;  %v35_v23 = vmul.f32 0.6931472, %v77_v19 }
  0x33   :  { %v44_v25 = vmul.f32 0.6931472, %v79_v22 }
  0x34   :  { %v41_v26 = vsel %vm40_vm0, %v38_v18, %v35_v23 }
  0x35   :  { %v51_v27 = vsub.f32 %v23_v20, %v41_v26  ;;  %v50_v28 = vsel %vm49_vm1, %v47_v21, %v44_v25 }
  0x36   :  { %v52_v29 = vsub.f32 %v24_v24, %v50_v28 }
  0x37   :  { %53 = vst [vmem:[#allocation5] sm:$0xff] %v51_v27 }
  0x38   :  { %54 = vst [vmem:[#allocation5 + $0x8] sm:$0xff] %v52_v29 }
  0x39   :  { %111 = shalt.err (!%p108_p9)
}
  0x3a   :  { %64 = dma.vmem_to_hbm [thread:$0]  %s62_s11, 256, %s143_s1, [#allocation4]  }
  0x3b   :  { %122 = dma.done.wait [#allocation4], 256  }
  0x3c   :  { %123 = vsyncadd [#allocation4], 4294967040 }
  0x3d   :  { %68 = vsyncpa [#allocation3], 1 }
  0x3e   :  { %69 = vsyncpa [#allocation4], 1 }

</bundles_post_ra>
